<compile_context>
chip_gen: v6e
topology: v6e:2x2x1
jax: 0.10.0
libtpu: 0.0.40
codegen_flags: <defaults>
</compile_context>

<pallas_src>
import jax
import jax.numpy as jnp
from jax.experimental import pallas as pl
from jax.experimental.pallas import tpu as pltpu


def _reg_loss_kernel(ind_ref,                         # SMEM (B, K) int32 (scalar prefetch)
                     mask_ref, feat_ref, target_ref,  # VMEM blocks
                     out_ref,                         # VMEM (1, 1) f32
                     pred_scr, loss_acc, num_acc):    # VMEM scratch
    b = pl.program_id(0)

    @pl.when(b == 0)
    def _():
        loss_acc[...] = jnp.zeros_like(loss_acc)
        num_acc[...] = jnp.zeros_like(num_acc)

    k_max = target_ref.shape[0]

    # Gather: pred[k, :] = feat[ind[b, k], :]  (row gather on the sublane axis).
    for k in range(k_max):
        idx = ind_ref[b, k]
        pred_scr[pl.ds(k, 1), :] = feat_ref[pl.ds(idx, 1), :]

    pred = pred_scr[...]            # (K, C) f32
    tgt = target_ref[...]           # (K, C) f32
    m = mask_ref[...]               # (K, 1) f32

    diff = (pred - tgt) * m         # == pred*m - tgt*m for the binary mask
    adiff = jnp.abs(diff)
    sl1 = jnp.where(adiff < 1.0, 0.5 * diff * diff, adiff - 0.5)

    loss_acc[...] += sl1            # lane/sublane-wide partial sums
    num_acc[...] += m

    @pl.when(b == pl.num_programs(0) - 1)
    def _():
        total = jnp.sum(loss_acc[...])
        num = jnp.sum(num_acc[...])
        out_ref[...] = (total / (num + 1e-4)).reshape(1, 1)


@jax.jit
def reg_loss(output, mask, ind, target):
    """output: (B, C, H, W); mask: (B, K); ind: (B, K) int; target: (B, K, C)."""
    B, C, H, W = output.shape
    K = ind.shape[1]
    HW = H * W

    # (B, H*W, C) feature slab so the gather is a sublane row gather.  (The
    # PyTorch reference performs the same permute(0,2,3,1).contiguous() copy.)
    feat = jnp.transpose(output, (0, 2, 3, 1)).reshape(B, HW, C).astype(jnp.float32)
    ind_i32 = ind.astype(jnp.int32)
    mask3 = mask.reshape(B, K, 1).astype(jnp.float32)
    target_f = target.astype(jnp.float32)

    out = pl.pallas_call(
        _reg_loss_kernel,
        out_shape=jax.ShapeDtypeStruct((1, 1), jnp.float32),
        grid_spec=pltpu.PrefetchScalarGridSpec(
            num_scalar_prefetch=1,                 # `ind` lands in SMEM
            grid=(B,),
            in_specs=[
                pl.BlockSpec((None, K, 1), lambda b, ind_sref: (b, 0, 0)),   # mask
                pl.BlockSpec((None, HW, C), lambda b, ind_sref: (b, 0, 0)),  # feat
                pl.BlockSpec((None, K, C), lambda b, ind_sref: (b, 0, 0)),   # target
            ],
            out_specs=pl.BlockSpec((1, 1), lambda b, ind_sref: (0, 0)),
            scratch_shapes=[
                pltpu.VMEM((K, C), jnp.float32),   # gathered pred
                pltpu.VMEM((K, C), jnp.float32),   # smooth-L1 partial sums
                pltpu.VMEM((K, 1), jnp.float32),   # mask partial sums
            ],
        ),
        compiler_params=pltpu.CompilerParams(
            dimension_semantics=("arbitrary",)),
    )(ind_i32, mask3, feat, target_f)
    return out[0, 0]


def _reg_loss_ref(output, mask, ind, target):
    B, C, H, W = output.shape
    feat = jnp.transpose(output, (0, 2, 3, 1)).reshape(B, H * W, C)
    pred = jnp.take_along_axis(feat, ind[..., None].astype(jnp.int32), axis=1)
    m = mask.astype(jnp.float32)
    num = m.sum()
    m3 = m[..., None]
    d = pred * m3 - target * m3
    ad = jnp.abs(d)
    sl1 = jnp.where(ad < 1.0, 0.5 * d * d, ad - 0.5)
    return sl1.sum() / (num + 1e-4)


if __name__ == "__main__":
    key = jax.random.PRNGKey(0)
    k1, k2, k3, k4 = jax.random.split(key, 4)

    B, C, H, W, K = 2, 4, 16, 16, 8
    output = jax.random.normal(k1, (B, C, H, W), jnp.float32)
    ind = jax.random.randint(k2, (B, K), 0, H * W, jnp.int32)
    mask = (jax.random.uniform(k3, (B, K)) > 0.3).astype(jnp.float32)
    target = jax.random.normal(k4, (B, K, C), jnp.float32)

    out = reg_loss(output, mask, ind, target)
    jax.block_until_ready(out)

    ref = _reg_loss_ref(output, mask, ind, target)
    assert jnp.allclose(out, ref, rtol=1e-4, atol=1e-4), (out, ref)

    print("KERNEL_OK")
</pallas_src>

<mosaic_0001>
module attributes {stable_mosaic.version = 11 : i64} {
  func.func @_reg_loss_kernel(%arg0: i32, %arg1: memref<2x8xi32, #tpu.memory_space<smem>>, %arg2: memref<1x8x1xf32, #tpu.memory_space<vmem>>, %arg3: memref<1x256x4xf32, #tpu.memory_space<vmem>>, %arg4: memref<1x8x4xf32, #tpu.memory_space<vmem>>, %arg5: memref<1x1xf32, #tpu.memory_space<vmem>>, %arg6: memref<8x4xf32, #tpu.memory_space<vmem>>, %arg7: memref<8x4xf32, #tpu.memory_space<vmem>>, %arg8: memref<8x1xf32, #tpu.memory_space<vmem>>) attributes {dimension_semantics = [#tpu.dimension_semantics<arbitrary>], iteration_bounds = array<i64: 2>, scalar_prefetch = 1 : i64, scratch_operands = 3 : i64, tpu.core_type = #tpu.core_type<tc>, window_params = [{transform_indices = @transform_0, window_bounds = array<i64: 1, 8, 1>}, {transform_indices = @transform_1, window_bounds = array<i64: 1, 256, 4>}, {transform_indices = @transform_2, window_bounds = array<i64: 1, 8, 4>}, {pipeline_mode = #tpu.pipeline_mode<synchronous>, transform_indices = @transform_3, window_bounds = array<i64: 1, 1>}]} {
    %c0_i32 = arith.constant 0 : i32
    %0 = arith.cmpi eq, %arg0, %c0_i32 : i32
    %1 = arith.extui %0 : i1 to i32
    %c0_i32_0 = arith.constant 0 : i32
    %2 = arith.cmpi ne, %1, %c0_i32_0 : i32
    scf.if %2 {
      %cst_52 = arith.constant 0.000000e+00 : f32
      %77 = vector.broadcast %cst_52 : f32 to vector<8x4xf32>
      %c0_53 = arith.constant 0 : index
      %c0_54 = arith.constant 0 : index
      %78 = vector.load %arg7[%c0_53, %c0_54] : memref<8x4xf32, #tpu.memory_space<vmem>>, vector<8x4xf32>
      tpu.vector_store %arg7[%c0_53, %c0_54], %77 {strides = array<i32>} : memref<8x4xf32, #tpu.memory_space<vmem>>, vector<8x4xf32>,
      %cst_55 = arith.constant 0.000000e+00 : f32
      %79 = vector.broadcast %cst_55 : f32 to vector<8x1xf32>
      %c0_56 = arith.constant 0 : index
      %c0_57 = arith.constant 0 : index
      %80 = vector.load %arg8[%c0_56, %c0_57] : memref<8x1xf32, #tpu.memory_space<vmem>>, vector<8x1xf32>
      tpu.vector_store %arg8[%c0_56, %c0_57], %79 {strides = array<i32>} : memref<8x1xf32, #tpu.memory_space<vmem>>, vector<8x1xf32>,
    } else {
    }
    %3 = arith.index_cast %arg0 : i32 to index
    %c0 = arith.constant 0 : index
    %4 = memref.load %arg1[%3, %c0] : memref<2x8xi32, #tpu.memory_space<smem>>
    %c0_1 = arith.constant 0 : index
    %5 = arith.index_cast %4 : i32 to index
    %c0_2 = arith.constant 0 : index
    %6 = vector.load %arg3[%c0_1, %5, %c0_2] : memref<1x256x4xf32, #tpu.memory_space<vmem>>, vector<1x1x4xf32>
    %7 = vector.shape_cast %6 : vector<1x1x4xf32> to vector<1x4xf32>
    %c0_3 = arith.constant 0 : index
    %c0_4 = arith.constant 0 : index
    %8 = vector.load %arg6[%c0_3, %c0_4] : memref<8x4xf32, #tpu.memory_space<vmem>>, vector<1x4xf32>
    tpu.vector_store %arg6[%c0_3, %c0_4], %7 {strides = array<i32>} : memref<8x4xf32, #tpu.memory_space<vmem>>, vector<1x4xf32>,
    %9 = arith.index_cast %arg0 : i32 to index
    %c1 = arith.constant 1 : index
    %10 = memref.load %arg1[%9, %c1] : memref<2x8xi32, #tpu.memory_space<smem>>
    %c0_5 = arith.constant 0 : index
    %11 = arith.index_cast %10 : i32 to index
    %c0_6 = arith.constant 0 : index
    %12 = vector.load %arg3[%c0_5, %11, %c0_6] : memref<1x256x4xf32, #tpu.memory_space<vmem>>, vector<1x1x4xf32>
    %13 = vector.shape_cast %12 : vector<1x1x4xf32> to vector<1x4xf32>
    %c1_7 = arith.constant 1 : index
    %c0_8 = arith.constant 0 : index
    %14 = vector.load %arg6[%c1_7, %c0_8] : memref<8x4xf32, #tpu.memory_space<vmem>>, vector<1x4xf32>
    tpu.vector_store %arg6[%c1_7, %c0_8], %13 {strides = array<i32>} : memref<8x4xf32, #tpu.memory_space<vmem>>, vector<1x4xf32>,
    %15 = arith.index_cast %arg0 : i32 to index
    %c2 = arith.constant 2 : index
    %16 = memref.load %arg1[%15, %c2] : memref<2x8xi32, #tpu.memory_space<smem>>
    %c0_9 = arith.constant 0 : index
    %17 = arith.index_cast %16 : i32 to index
    %c0_10 = arith.constant 0 : index
    %18 = vector.load %arg3[%c0_9, %17, %c0_10] : memref<1x256x4xf32, #tpu.memory_space<vmem>>, vector<1x1x4xf32>
    %19 = vector.shape_cast %18 : vector<1x1x4xf32> to vector<1x4xf32>
    %c2_11 = arith.constant 2 : index
    %c0_12 = arith.constant 0 : index
    %20 = vector.load %arg6[%c2_11, %c0_12] : memref<8x4xf32, #tpu.memory_space<vmem>>, vector<1x4xf32>
    tpu.vector_store %arg6[%c2_11, %c0_12], %19 {strides = array<i32>} : memref<8x4xf32, #tpu.memory_space<vmem>>, vector<1x4xf32>,
    %21 = arith.index_cast %arg0 : i32 to index
    %c3 = arith.constant 3 : index
    %22 = memref.load %arg1[%21, %c3] : memref<2x8xi32, #tpu.memory_space<smem>>
    %c0_13 = arith.constant 0 : index
    %23 = arith.index_cast %22 : i32 to index
    %c0_14 = arith.constant 0 : index
    %24 = vector.load %arg3[%c0_13, %23, %c0_14] : memref<1x256x4xf32, #tpu.memory_space<vmem>>, vector<1x1x4xf32>
    %25 = vector.shape_cast %24 : vector<1x1x4xf32> to vector<1x4xf32>
    %c3_15 = arith.constant 3 : index
    %c0_16 = arith.constant 0 : index
    %26 = vector.load %arg6[%c3_15, %c0_16] : memref<8x4xf32, #tpu.memory_space<vmem>>, vector<1x4xf32>
    tpu.vector_store %arg6[%c3_15, %c0_16], %25 {strides = array<i32>} : memref<8x4xf32, #tpu.memory_space<vmem>>, vector<1x4xf32>,
    %27 = arith.index_cast %arg0 : i32 to index
    %c4 = arith.constant 4 : index
    %28 = memref.load %arg1[%27, %c4] : memref<2x8xi32, #tpu.memory_space<smem>>
    %c0_17 = arith.constant 0 : index
    %29 = arith.index_cast %28 : i32 to index
    %c0_18 = arith.constant 0 : index
    %30 = vector.load %arg3[%c0_17, %29, %c0_18] : memref<1x256x4xf32, #tpu.memory_space<vmem>>, vector<1x1x4xf32>
    %31 = vector.shape_cast %30 : vector<1x1x4xf32> to vector<1x4xf32>
    %c4_19 = arith.constant 4 : index
    %c0_20 = arith.constant 0 : index
    %32 = vector.load %arg6[%c4_19, %c0_20] : memref<8x4xf32, #tpu.memory_space<vmem>>, vector<1x4xf32>
    tpu.vector_store %arg6[%c4_19, %c0_20], %31 {strides = array<i32>} : memref<8x4xf32, #tpu.memory_space<vmem>>, vector<1x4xf32>,
    %33 = arith.index_cast %arg0 : i32 to index
    %c5 = arith.constant 5 : index
    %34 = memref.load %arg1[%33, %c5] : memref<2x8xi32, #tpu.memory_space<smem>>
    %c0_21 = arith.constant 0 : index
    %35 = arith.index_cast %34 : i32 to index
    %c0_22 = arith.constant 0 : index
    %36 = vector.load %arg3[%c0_21, %35, %c0_22] : memref<1x256x4xf32, #tpu.memory_space<vmem>>, vector<1x1x4xf32>
    %37 = vector.shape_cast %36 : vector<1x1x4xf32> to vector<1x4xf32>
    %c5_23 = arith.constant 5 : index
    %c0_24 = arith.constant 0 : index
    %38 = vector.load %arg6[%c5_23, %c0_24] : memref<8x4xf32, #tpu.memory_space<vmem>>, vector<1x4xf32>
    tpu.vector_store %arg6[%c5_23, %c0_24], %37 {strides = array<i32>} : memref<8x4xf32, #tpu.memory_space<vmem>>, vector<1x4xf32>,
    %39 = arith.index_cast %arg0 : i32 to index
    %c6 = arith.constant 6 : index
    %40 = memref.load %arg1[%39, %c6] : memref<2x8xi32, #tpu.memory_space<smem>>
    %c0_25 = arith.constant 0 : index
    %41 = arith.index_cast %40 : i32 to index
    %c0_26 = arith.constant 0 : index
    %42 = vector.load %arg3[%c0_25, %41, %c0_26] : memref<1x256x4xf32, #tpu.memory_space<vmem>>, vector<1x1x4xf32>
    %43 = vector.shape_cast %42 : vector<1x1x4xf32> to vector<1x4xf32>
    %c6_27 = arith.constant 6 : index
    %c0_28 = arith.constant 0 : index
    %44 = vector.load %arg6[%c6_27, %c0_28] : memref<8x4xf32, #tpu.memory_space<vmem>>, vector<1x4xf32>
    tpu.vector_store %arg6[%c6_27, %c0_28], %43 {strides = array<i32>} : memref<8x4xf32, #tpu.memory_space<vmem>>, vector<1x4xf32>,
    %45 = arith.index_cast %arg0 : i32 to index
    %c7 = arith.constant 7 : index
    %46 = memref.load %arg1[%45, %c7] : memref<2x8xi32, #tpu.memory_space<smem>>
    %c0_29 = arith.constant 0 : index
    %47 = arith.index_cast %46 : i32 to index
    %c0_30 = arith.constant 0 : index
    %48 = vector.load %arg3[%c0_29, %47, %c0_30] : memref<1x256x4xf32, #tpu.memory_space<vmem>>, vector<1x1x4xf32>
    %49 = vector.shape_cast %48 : vector<1x1x4xf32> to vector<1x4xf32>
    %c7_31 = arith.constant 7 : index
    %c0_32 = arith.constant 0 : index
    %50 = vector.load %arg6[%c7_31, %c0_32] : memref<8x4xf32, #tpu.memory_space<vmem>>, vector<1x4xf32>
    tpu.vector_store %arg6[%c7_31, %c0_32], %49 {strides = array<i32>} : memref<8x4xf32, #tpu.memory_space<vmem>>, vector<1x4xf32>,
    %c0_33 = arith.constant 0 : index
    %c0_34 = arith.constant 0 : index
    %51 = vector.load %arg6[%c0_33, %c0_34] : memref<8x4xf32, #tpu.memory_space<vmem>>, vector<8x4xf32>
    %c0_35 = arith.constant 0 : index
    %c0_36 = arith.constant 0 : index
    %c0_37 = arith.constant 0 : index
    %52 = vector.load %arg4[%c0_35, %c0_36, %c0_37] : memref<1x8x4xf32, #tpu.memory_space<vmem>>, vector<1x8x4xf32>
    %53 = vector.shape_cast %52 : vector<1x8x4xf32> to vector<8x4xf32>
    %c0_38 = arith.constant 0 : index
    %c0_39 = arith.constant 0 : index
    %c0_40 = arith.constant 0 : index
    %54 = vector.load %arg2[%c0_38, %c0_39, %c0_40] : memref<1x8x1xf32, #tpu.memory_space<vmem>>, vector<1x8x1xf32>
    %55 = vector.shape_cast %54 : vector<1x8x1xf32> to vector<8x1xf32>
    %56 = arith.subf %51, %53 : vector<8x4xf32>
    %57 = vector.broadcast %55 : vector<8x1xf32> to vector<8x4xf32>
    %58 = arith.mulf %56, %57 : vector<8x4xf32>
    %59 = math.absf %58 : vector<8x4xf32>
    %cst = arith.constant 1.000000e+00 : f32
    %60 = vector.broadcast %cst : f32 to vector<8x4xf32>
    %61 = arith.cmpf olt, %59, %60 : vector<8x4xf32>
    %cst_41 = arith.constant 5.000000e-01 : f32
    %62 = vector.broadcast %cst_41 : f32 to vector<8x4xf32>
    %63 = arith.mulf %62, %58 : vector<8x4xf32>
    %64 = arith.mulf %63, %58 : vector<8x4xf32>
    %cst_42 = arith.constant 5.000000e-01 : f32
    %65 = vector.broadcast %cst_42 : f32 to vector<8x4xf32>
    %66 = arith.subf %59, %65 : vector<8x4xf32>
    %67 = arith.select %61, %64, %66 : vector<8x4xi1>, vector<8x4xf32>
    %c0_43 = arith.constant 0 : index
    %c0_44 = arith.constant 0 : index
    %68 = vector.load %arg7[%c0_43, %c0_44] : memref<8x4xf32, #tpu.memory_space<vmem>>, vector<8x4xf32>
    %69 = arith.addf %68, %67 : vector<8x4xf32>
    %c0_45 = arith.constant 0 : index
    %c0_46 = arith.constant 0 : index
    %70 = vector.load %arg7[%c0_45, %c0_46] : memref<8x4xf32, #tpu.memory_space<vmem>>, vector<8x4xf32>
    tpu.vector_store %arg7[%c0_45, %c0_46], %69 {strides = array<i32>} : memref<8x4xf32, #tpu.memory_space<vmem>>, vector<8x4xf32>,
    %c0_47 = arith.constant 0 : index
    %c0_48 = arith.constant 0 : index
    %71 = vector.load %arg8[%c0_47, %c0_48] : memref<8x1xf32, #tpu.memory_space<vmem>>, vector<8x1xf32>
    %72 = arith.addf %71, %55 : vector<8x1xf32>
    %c0_49 = arith.constant 0 : index
    %c0_50 = arith.constant 0 : index
    %73 = vector.load %arg8[%c0_49, %c0_50] : memref<8x1xf32, #tpu.memory_space<vmem>>, vector<8x1xf32>
    tpu.vector_store %arg8[%c0_49, %c0_50], %72 {strides = array<i32>} : memref<8x1xf32, #tpu.memory_space<vmem>>, vector<8x1xf32>,
    %c1_i32 = arith.constant 1 : i32
    %74 = arith.cmpi eq, %arg0, %c1_i32 : i32
    %75 = arith.extui %74 : i1 to i32
    %c0_i32_51 = arith.constant 0 : i32
    %76 = arith.cmpi ne, %75, %c0_i32_51 : i32
    scf.if %76 {
      %c0_52 = arith.constant 0 : index
      %c0_53 = arith.constant 0 : index
      %77 = vector.load %arg7[%c0_52, %c0_53] : memref<8x4xf32, #tpu.memory_space<vmem>>, vector<8x4xf32>
      %78 = vector.shape_cast %77 : vector<8x4xf32> to vector<1x8x4xf32>
      %cst_54 = arith.constant dense<0.000000e+00> : vector<1xf32>
      %79 = vector.multi_reduction <add>, %78, %cst_54 [1, 2] : vector<1x8x4xf32> to vector<1xf32>
      %80 = vector.shape_cast %79 : vector<1xf32> to vector<1x1x1xf32>
      %81 = vector.extract %80[0, 0, 0] : f32 from vector<1x1x1xf32>
      %c0_55 = arith.constant 0 : index
      %c0_56 = arith.constant 0 : index
      %82 = vector.load %arg8[%c0_55, %c0_56] : memref<8x1xf32, #tpu.memory_space<vmem>>, vector<8x1xf32>
      %83 = vector.shape_cast %82 : vector<8x1xf32> to vector<1x8x1xf32>
      %cst_57 = arith.constant dense<0.000000e+00> : vector<1xf32>
      %84 = vector.multi_reduction <add>, %83, %cst_57 [1, 2] : vector<1x8x1xf32> to vector<1xf32>
      %85 = vector.shape_cast %84 : vector<1xf32> to vector<1x1x1xf32>
      %86 = vector.extract %85[0, 0, 0] : f32 from vector<1x1x1xf32>
      %cst_58 = arith.constant 9.99999974E-5 : f32
      %87 = arith.addf %86, %cst_58 : f32
      %88 = arith.divf %81, %87 : f32
      %89 = vector.broadcast %88 : f32 to vector<1x1xf32>
      %c0_59 = arith.constant 0 : index
      %c0_60 = arith.constant 0 : index
      %90 = vector.load %arg5[%c0_59, %c0_60] : memref<1x1xf32, #tpu.memory_space<vmem>>, vector<1x1xf32>
      tpu.vector_store %arg5[%c0_59, %c0_60], %89 {strides = array<i32>} : memref<1x1xf32, #tpu.memory_space<vmem>>, vector<1x1xf32>,
    } else {
    }
    return
  }
  func.func @transform_0(%arg0: i32, %arg1: memref<2x8xi32, #tpu.memory_space<smem>>) -> (i32, i32, i32) {
    %c0_i32 = arith.constant 0 : i32
    %c0_i32_0 = arith.constant 0 : i32
    %c0_i32_1 = arith.constant 0 : i32
    return %arg0, %c0_i32, %c0_i32_0 : i32, i32, i32
  }
  func.func @transform_1(%arg0: i32, %arg1: memref<2x8xi32, #tpu.memory_space<smem>>) -> (i32, i32, i32) {
    %c0_i32 = arith.constant 0 : i32
    %c0_i32_0 = arith.constant 0 : i32
    %c0_i32_1 = arith.constant 0 : i32
    return %arg0, %c0_i32, %c0_i32_0 : i32, i32, i32
  }
  func.func @transform_2(%arg0: i32, %arg1: memref<2x8xi32, #tpu.memory_space<smem>>) -> (i32, i32, i32) {
    %c0_i32 = arith.constant 0 : i32
    %c0_i32_0 = arith.constant 0 : i32
    %c0_i32_1 = arith.constant 0 : i32
    return %arg0, %c0_i32, %c0_i32_0 : i32, i32, i32
  }
  func.func @transform_3(%arg0: i32, %arg1: memref<2x8xi32, #tpu.memory_space<smem>>) -> (i32, i32) {
    %c0_i32 = arith.constant 0 : i32
    %c0_i32_0 = arith.constant 0 : i32
    %c0_i32_1 = arith.constant 0 : i32
    return %c0_i32, %c0_i32_0 : i32, i32
  }
}

</mosaic_0001>

<bundles_post_ra>
// kernel: reg_loss.1
= control target key start
LH: loop header
LB: loop body
LE: loop exit
PB: predicated region body
PF: predicated region fallthrough
CT: control target
= control target key end

     0   :  { %s571_s0 = inlined_call_operand.vmem [shape: s32[2,8], index: 0, kind: input, shape index: {}]   ;;  %s572_s1 = inlined_call_operand.vmem [shape: f32[2,8,1], index: 1, kind: input, shape index: {}]   ;;  %s573_s2 = inlined_call_operand.vmem [shape: f32[2,256,4], index: 2, kind: input, shape index: {}]   ;;  %s574_s3 = inlined_call_operand.vmem [shape: f32[2,8,4], index: 3, kind: input, shape index: {}]   ;;  %s575_s4 = inlined_call_operand.hbm [shape: f32[1,1], index: 4, kind: output, shape index: {}]  }
   0x1   :  { %s9_s17 = sshll.u32 %s571_s0, 4  ;;  %s10_s17 = int_to_ptr.vmem [resolvable:$true] %s9_s17 }
   0x2   :  { %s427_s18 = scalar_lea.vmem %s10_s17, 32  ;;  %p432_p1 = scmp.lt.s32.totalorder %s10_s17, %s10_s17 }
   0x3   :  { %p428_p0 = scmp.ne.s32.totalorder %s10_s17, %s427_s18  ;;  %p433_p2 = scmp.lt.s32.totalorder %s427_s18, %s427_s18 }
   0x5   :  { %p434_p3 = por %p433_p2, %p432_p1 }
   0x7   :  { %p435_p4 = pnand %p434_p3, %p428_p0 }
   0x9   :  { %438 = shalt.err (!%p435_p4)  }
   0xa   :  { %s477_s19 = smov [#allocation6]  }
   0xb   :  { %12 = dma.vmem_to_smem %s10_s17, 32, %s477_s19, [#allocation5] }
   0xc   :  { %467 = dma.done.wait [#allocation5], 32 }
   0xd   :  { %468 = vsyncadd [#allocation5], 4294967264 }
   0xe   :  { %14 = sfence }
   0xf   :  { %15 = vsyncpa [#allocation8], 0  ;;  %s509_s20 = smov 0  }
  0x10 LB: > { %s515_s0 = sadd.s32 4294967295, %s475_s20   ;;  %p386_p5 = scmp.ge.s32.totalorder %s475_s20, 1  ;;  %s475_s20 = sphi %s509_s20, %s21_s20  }
  0x11   : > { %p158_p6 = scmp.lt.s32.totalorder %s475_s20, 3 }
  0x13   : > { %p159_p7 = pnand %p386_p5, %p158_p6 }
  0x14   : > { %p185_p8 = scmp.lt.s32.totalorder (!%p159_p7), %s515_s0, 1  ;;  %p391_p9 = scmp.ne.s32.totalorder (!%p159_p7), %s515_s0, 0 }
  0x15   : > { %162 = sbr.rel (%p159_p7) target bundleno = 469 (0x1d5), region = 32 }
  0x1a   : > { %s186_s21 = scalar_select %p185_p8, %s515_s0, 1 }
  0x1b   : > { %201 = sbr.rel (%p391_p9) target bundleno = 35 (0x23), region = 36 }
  0x1c   : > { %s387_s22 = sshll.u32 %s186_s21, 3  ;;  %s399_s23 = sshll.u32 %s186_s21, 8 }
  0x1d   : > { %s188_s26 = scalar_lea.vmem %s572_s1, %s387_s22  ;;  %s527_s29 = scalar_lea.vmem %s573_s2, %s399_s23 }
  0x1e   : > { %s532_s6 = scalar_lea.vmem %s574_s3, %s387_s22 }
  0x20   : > { %vm202_vm0 = vcmask 31744   ;;  %vm204_vm1 = vcmask 7168   ;;  %v478_v0 = vmov 0.0  }
  0x21   : > { %203 = vst.msk [vmem:[#allocation3] sm:$0xff] %vm202_vm0, %v478_v0 }
  0x22   : > { %205 = vst.msk [vmem:[#allocation4] sm:$0xff] %vm204_vm1, %v478_v0 }
  0x23 PF: > { %v249_v1 = vld [vmem:[%s188_s26] sm:$0xff]  ;;  %vm269_vm2 = vcmask 7168   ;;  %v479_v3 = vmov 0   ;;  %s392_s7 = sshll.u32 %s515_s0, 7  ;;  %vm210_vm3 = vcmask 24576   ;;  %vm265_vm5 = vcmask 31744  }
  0x24   : > { %424 = vset.pattern.permute.xlu0 %v479_v3  ;;  %s207_s8 = sld [smem:[#allocation6 + %s392_s7]]  ;;  %s212_s9 = sadd.s32 1, %s392_s7  ;;  %v248_v14 = vld [vmem:[%s532_s6] sm:$0xff] }
  0x25   : > { %253 = vperm.xlu0 %424, %v249_v1   ;;  %s213_s10 = sld [smem:[#allocation6 + %s212_s9]]  ;;  %s217_s11 = sadd.s32 2, %s392_s7 }
  0x26   : > { %s218_s12 = sld [smem:[#allocation6 + %s217_s11]]  ;;  %s222_s13 = sadd.s32 3, %s392_s7 }
  0x27   : > { %s223_s14 = sld [smem:[#allocation6 + %s222_s13]]  ;;  %s227_s15 = sadd.s32 4, %s392_s7 }
  0x28   : > { %s228_s16 = sld [smem:[#allocation6 + %s227_s15]]  ;;  %s232_s17 = sadd.s32 5, %s392_s7  ;;  %v263_v20 = vld [vmem:[#allocation3] sm:$0xff] }
  0x29   : > { %v267_v2 = vld [vmem:[#allocation4] sm:$0xff]  ;;  %s233_s18 = sld [smem:[#allocation6 + %s232_s17]]  ;;  %s237_s19 = sadd.s32 6, %s392_s7 }
  0x2a   : > { %v268_v4 = vadd.f32 %v267_v2, %v249_v1  ;;  %s208_s21 = scalar_lea.vmem %s527_s29, %s207_s8  ;;  %s238_s22 = sld [smem:[#allocation6 + %s237_s19]] }
  0x2b   : > { %v209_v5 = vld [vmem:[%s208_s21] sm:$0x1]  ;;  %s214_s23 = scalar_lea.vmem %s527_s29, %s213_s10  ;;  %s242_s24 = sadd.s32 7, %s392_s7 }
  0x2c   : > { %270 = vst.msk [vmem:[#allocation4] sm:$0xff] %vm269_vm2, %v268_v4  ;;  %v215_v6 = vld [vmem:[%s214_s23] sm:$0x1]  ;;  %s219_s25 = scalar_lea.vmem %s527_s29, %s218_s12  ;;  %s243_s26 = sld [smem:[#allocation6 + %s242_s24]] }
  0x2d   : > { %211 = vst.msk [vmem:[#allocation2] sm:$0x1] %vm210_vm3, %v209_v5  ;;  %216 = vst.msk [vmem:[#allocation2 + $0x1] sm:$0x1] %vm210_vm3, %v215_v6  ;;  %v220_v7 = vld [vmem:[%s219_s25] sm:$0x1]  ;;  %s224_s27 = scalar_lea.vmem %s527_s29, %s223_s14 }
  0x2e   : > { %221 = vst.msk [vmem:[#allocation2 + $0x2] sm:$0x1] %vm210_vm3, %v220_v7  ;;  %v225_v8 = vld [vmem:[%s224_s27] sm:$0x1]  ;;  %s229_s28 = scalar_lea.vmem %s527_s29, %s228_s16  ;;  %p394_p10 = scmp.ne.s32.totalorder %s515_s0, 1 }
  0x2f   : > { %226 = vst.msk [vmem:[#allocation2 + $0x3] sm:$0x1] %vm210_vm3, %v225_v8  ;;  %v230_v9 = vld [vmem:[%s229_s28] sm:$0x1]  ;;  %s234_s30 = scalar_lea.vmem %s527_s29, %s233_s18 }
  0x30   : > { %231 = vst.msk [vmem:[#allocation2 + $0x4] sm:$0x1] %vm210_vm3, %v230_v9  ;;  %v235_v10 = vld [vmem:[%s234_s30] sm:$0x1]  ;;  %s239_s5 = scalar_lea.vmem %s527_s29, %s238_s22 }
  0x31   : > { %236 = vst.msk [vmem:[#allocation2 + $0x5] sm:$0x1] %vm210_vm3, %v235_v10  ;;  %v240_v11 = vld [vmem:[%s239_s5] sm:$0x1] }
  0x32   : > { %241 = vst.msk [vmem:[#allocation2 + $0x6] sm:$0x1] %vm210_vm3, %v240_v11  ;;  %s244_s7 = scalar_lea.vmem %s527_s29, %s243_s26 }
  0x33   : > { %v245_v12 = vld [vmem:[%s244_s7] sm:$0x1] }
  0x34   : > { %246 = vst.msk [vmem:[#allocation2 + $0x7] sm:$0x1] %vm210_vm3, %v245_v12 }
  0x3b   : > { %v247_v13 = vld [vmem:[#allocation2] sm:$0xff] }
  0x3c   : > { %v250_v15 = vsub.f32 %v247_v13, %v248_v14 }
  0xa0   : > { %v254_v16 = vpop.permute.xlu0 %253 }
  0xa1   : > { %v256_v17 = vmul.f32 %v254_v16, %v250_v15 }
  0xa3   : > { %v257_v18 = vand.u32 2147483647, %v256_v17  ;;  %v259_v19 = vmul.f32 0.5, %v256_v17 }
  0xa5   : > { %vm258_vm4 = vcmp.lt.f32.partialorder %v257_v18, 1.0  ;;  %v260_v21 = vmul.f32 %v259_v19, %v256_v17  ;;  %v393_v22 = vadd.f32 -0.5, %v257_v18 }
  0xa6   : > { %274 = sbr.rel (%p394_p10) target bundleno = 454 (0x1c6), region = 40 }
  0xa7   : > { %v262_v23 = vsel %vm258_vm4, %v260_v21, %v393_v22 }
  0xa8   : > { %v264_v24 = vadd.f32 %v263_v20, %v262_v23 }
  0xaa   : > { %266 = vst.msk [vmem:[#allocation3] sm:$0xff] %vm265_vm5, %v264_v24 }
  0xab   : > { %v286_v26 = vld [vmem:[#allocation4] sm:$0xff]  ;;  %vm303_vm6 = vcmask 0  }
  0xac   : > { %v287_v28 = vsel %vm269_vm2, %v286_v26, 0.0 }
  0xb1   : > { %v275_v25 = vld [vmem:[#allocation3] sm:$0xff] }
  0xb2   : > { %v276_v27 = vsel %vm265_vm5, %v275_v25, 0.0 }
  0xb3   : > { %277 = vadd.xlane.f32.xlu0 %v276_v27 }
  0xb7   : > { %288 = vadd.xlane.f32.xlu0 %v287_v28 }
 0x13c   : > { %v278_v29 = vpop.xlane.xlu0 %277 }
 0x13d   : > { %v279_v30 = vrot.slane %v278_v29, 4 }
 0x13f   : > { %v280_v31 = vadd.f32 %v279_v30, %v278_v29 }
 0x140   : > { %v289_v32 = vpop.xlane.xlu0 %288 }
 0x141   : > { %v281_v33 = vrot.slane %v280_v31, 2  ;;  %v290_v34 = vrot.slane %v289_v32, 4 }
 0x143   : > { %v291_v35 = vadd.f32 %v290_v34, %v289_v32  ;;  %v282_v36 = vadd.f32 %v281_v33, %v280_v31 }
 0x145   : > { %v292_v37 = vrot.slane %v291_v35, 2  ;;  %v283_v38 = vrot.slane %v282_v36, 1 }
 0x147   : > { %v293_v39 = vadd.f32 %v292_v37, %v291_v35  ;;  %v284_v40 = vadd.f32 %v283_v38, %v282_v36 }
 0x149   : > { %400 = vpush %v284_v40  ;;  %v294_v41 = vrot.slane %v293_v39, 1 }
 0x14b   : > { %v295_v42 = vadd.f32 %v294_v41, %v293_v39 }
 0x14d   : > { %402 = vpush %v295_v42 }
 0x17a   : > { %s401_s29 = spop %400 }
 0x17e   : > { %s403_s6 = spop %402 }
 0x17f   : > { %s297_s8 = sadd.f32 0.0001, %s403_s6 }
 0x181   : > { %v298_v43 = vstv %s297_s8 }
 0x182   : > { %425 = vrcp.f32 %v298_v43 }
 0x18f   : > { %v426_v44 = vpop.eup %425 }
 0x190   : > { %404 = vpush %v426_v44 }
 0x1c1   : > { %s405_s9 = spop %404 }
 0x1c2   : > { %s301_s10 = smul.f32 %s405_s9, %s401_s29 }
 0x1c4   : > { %v302_v45 = vstv %s301_s10 }
 0x1c5   : > { %304 = vst.msk [vmem:[#allocation7] sm:$0x1] %vm303_vm6, %v302_v45 }
 0x1c6 PF: > { %p410_p11 = scmp.eq.s32.totalorder %s515_s0, 1  ;;  %s480_s11 = smov [#allocation7]  }
 0x1c7   : > { %s312_s12 = sshll.u32 %s480_s11, 4  ;;  %s313_s12 = int_to_ptr.vmem [resolvable:$true] %s312_s12 }
 0x1c8   : > { %s439_s13 = scalar_lea.vmem %s313_s12, 16  ;;  %s445_s14 = scalar_lea.vmem %s313_s12, 32 }
 0x1c9   : > { %p440_p12 = scmp.ne.s32.totalorder %s313_s12, %s439_s13  ;;  %p446_p1 = scmp.lt.s32.totalorder %s313_s12, %s313_s12 }
 0x1ca   : > { %p447_p2 = scmp.lt.s32.totalorder %s445_s14, %s439_s13 }
 0x1cb   : > { %p441_p13 = pnand %p440_p12, %p410_p11 }
 0x1cc   : > { %p448_p3 = por %p447_p2, %p446_p1 }
 0x1cd   : > { %p442_p0 = pneg %p441_p13 }
 0x1cf   : > { %p449_p4 = pnand %p448_p3, %p442_p0 }
 0x1d1   : > { %452 = shalt.err (!%p449_p4)
}
 0x1d2   : > { %407 = dma.vmem_to_hbm [thread:$0]  (%p410_p11), %s313_s12, 16, %s575_s4, [#allocation8]  }
 0x1d3   : > { %470 = dma.done.wait (%p410_p11), [#allocation8], 16  }
 0x1d4   : > { %472 = vsyncadd (%p410_p11), [#allocation8], 4294967280 }
 0x1d5 PF: > { %s21_s20 = sadd.s32 1, %s475_s20  }
 0x1d6   : > { %p18_p5 = scmp.ge.s32.totalorder %s21_s20, 4  }
 0x1d8   :  { %20 = sbr.rel (!%p18_p5) target bundleno = 16 (0x10), region = 81 }
 0x1dd   :  { %325 = vsyncpa [#allocation8], 1 }
 0x1de   :  { %327 = vsyncpa [#allocation8 + $0x1], 1 }

</bundles_post_ra>
